<compile_context>
chip_gen: v6e
topology: v6e:2x2x1
jax: 0.10.0
libtpu: 0.0.40
codegen_flags: <defaults>
</compile_context>

<pallas_src>
import functools

import jax
import jax.numpy as jnp
from jax.experimental import pallas as pl
from jax.experimental.pallas import tpu as pltpu

_MiB = 1024 * 1024


def _round_up(v, m):
    return ((v + m - 1) // m) * m


def _vmem_caps():
    """Return (budget_bytes, hard_limit_bytes) from the chip's physical VMEM."""
    phys = None
    try:
        info = pltpu.get_tpu_info()
        phys = int(getattr(info, "vmem_capacity_bytes", 0)) or None
    except Exception:
        phys = None
    if phys is None:
        phys = 64 * _MiB  # conservative (v7x-safe) fallback
    # v5e/v6e (128 MiB phys) -> ~96 MiB budget; v7x (64 MiB) -> ~32 MiB budget.
    budget = min(100 * _MiB, max(24 * _MiB, phys - 32 * _MiB))
    hard_limit = max(32 * _MiB, phys - 8 * _MiB)
    return budget, hard_limit


def _mapping_kernel_fullk(x_ref, w_ref, b_ref, o_ref, *, compute_dtype):
    # x: (tm, K)   w: (tn, K)   b: (1, tn)   o: (tm, tn)
    x_t = x_ref[...]
    w_t = w_ref[...]
    if compute_dtype is not None:
        x_t = x_t.astype(compute_dtype)
        w_t = w_t.astype(compute_dtype)
    acc = jax.lax.dot_general(
        x_t, w_t,
        dimension_numbers=(((1,), (1,)), ((), ())),  # contract over K (trans_b)
        preferred_element_type=jnp.float32)
    o_ref[...] = (acc + b_ref[...].astype(jnp.float32)).astype(o_ref.dtype)


def _mapping_kernel_ksplit(x_ref, w_ref, b_ref, o_ref, acc_ref, *,
                           K, tk, compute_dtype, mask_k):
    # x: (tm, tk)  w: (tn, tk)  b: (1, tn)  o: (tm, tn)  acc: (tm, tn) f32
    k = pl.program_id(2)

    @pl.when(k == 0)
    def _():
        acc_ref[...] = jnp.zeros_like(acc_ref)

    x_t = x_ref[...]
    w_t = w_ref[...]
    if mask_k:
        # Zero out-of-range K columns of both operands in the last block so
        # out-of-bounds garbage (possibly NaN) never enters the reduction.
        col = jax.lax.broadcasted_iota(jnp.int32, (1, tk), 1)
        valid = col < (K - k * tk)
        x_t = jnp.where(valid, x_t, 0)
        w_t = jnp.where(valid, w_t, 0)
    if compute_dtype is not None:
        x_t = x_t.astype(compute_dtype)
        w_t = w_t.astype(compute_dtype)

    acc_ref[...] += jax.lax.dot_general(
        x_t, w_t,
        dimension_numbers=(((1,), (1,)), ((), ())),
        preferred_element_type=jnp.float32)

    @pl.when(k == pl.num_programs(2) - 1)
    def _():
        o_ref[...] = (acc_ref[...] + b_ref[...].astype(jnp.float32)
                      ).astype(o_ref.dtype)


def mapping_layer(x, weight, bias, *, tm=256, tn=256, tk=512,
                  compute_dtype=jnp.bfloat16,
                  vmem_budget_bytes=None,
                  force_pallas=False,
                  xla_fallback_bytes=1 * _MiB):
    """Forward of torch.nn.Linear: y = x @ weight.T + bias.

    x: (..., K)   weight: (N, K)   bias: (N,)   ->   y: (..., N)
    compute_dtype: dtype fed to the MXU (accumulation is always f32);
                   None = use input dtypes unchanged.
    """
    orig_shape = x.shape
    K = orig_shape[-1]
    x2 = x.reshape(-1, K)
    M = x2.shape[0]
    N, K_w = weight.shape
    assert K == K_w and bias.shape == (N,)
    out_dtype = x.dtype

    itx = x.dtype.itemsize
    itw = weight.dtype.itemsize
    itb = bias.dtype.itemsize
    ito = jnp.dtype(out_dtype).itemsize

    # Tiny problems: launch overhead dominates; let XLA fuse the dot.
    total_bytes = M * K * itx + N * K * itw + M * N * ito
    if not force_pallas and total_bytes < xla_fallback_bytes:
        y = jnp.dot(x2, weight.T) + bias
        return y.astype(out_dtype).reshape(*orig_shape[:-1], N)

    budget, hard_limit = _vmem_caps()
    if vmem_budget_bytes is not None:
        budget = vmem_budget_bytes

    # ------------------------- full-K path sizing --------------------------
    tm_fk = M if M <= tm else tm

    def fullk_bytes(tm_, tn_):
        # double-buffered inputs + outputs
        return 2 * (tm_ * K * itx + tn_ * K * itw + tn_ * itb + tm_ * tn_ * ito)

    tn_fk = None
    tn_candidates = [N]            # full output width first: x streamed once
    if N > tn:
        tn_candidates.append(tn)
    for cand in tn_candidates:
        if fullk_bytes(tm_fk, cand) <= budget:
            tn_fk = cand
            break

    if tn_fk is not None:
        # v7x has 2 TensorCores: avoid a 1-step grid on mid/large problems.
        if tm_fk == M and tn_fk == N:
            if M >= 256:
                tm_fk = _round_up(-(-M // 2), 16)
            elif N >= 256:
                tn_fk = _round_up(-(-N // 2), 128)

        # j OUTER, i inner: weight/bias block indices are constant across the
        # inner batch loop and stay VMEM-resident.
        grid = (pl.cdiv(N, tn_fk), pl.cdiv(M, tm_fk))
        kernel = functools.partial(_mapping_kernel_fullk,
                                   compute_dtype=compute_dtype)
        grid_spec = pltpu.PrefetchScalarGridSpec(
            num_scalar_prefetch=0,
            grid=grid,
            in_specs=[
                pl.BlockSpec((tm_fk, K), lambda j, i: (i, 0)),    # x
                pl.BlockSpec((tn_fk, K), lambda j, i: (j, 0)),    # weight (N, K)
                pl.BlockSpec((1, tn_fk), lambda j, i: (0, j)),    # bias
            ],
            out_specs=pl.BlockSpec((tm_fk, tn_fk), lambda j, i: (i, j)),
            scratch_shapes=[],
        )
        dim_sem = ("parallel", "parallel")
        vmem_limit = min(hard_limit,
                         max(32 * _MiB,
                             int(fullk_bytes(tm_fk, tn_fk) * 1.25) + 2 * _MiB))
    else:
        # ------------------------ K-split path sizing -----------------------
        tm_ks = M if M <= 512 else 512
        tn_ks = N if N <= 512 else 512
        tk_ks = max(128, min(max(tk, 512), (K // 128) * 128 if K >= 128 else 128))
        mask_k = (K % tk_ks) != 0

        grid = (pl.cdiv(M, tm_ks), pl.cdiv(N, tn_ks), pl.cdiv(K, tk_ks))
        kernel = functools.partial(_mapping_kernel_ksplit,
                                   K=K, tk=tk_ks,
                                   compute_dtype=compute_dtype, mask_k=mask_k)
        grid_spec = pltpu.PrefetchScalarGridSpec(
            num_scalar_prefetch=0,
            grid=grid,
            in_specs=[
                pl.BlockSpec((tm_ks, tk_ks), lambda i, j, k: (i, k)),   # x
                pl.BlockSpec((tn_ks, tk_ks), lambda i, j, k: (j, k)),   # weight
                pl.BlockSpec((1, tn_ks), lambda i, j, k: (0, j)),       # bias
            ],
            out_specs=pl.BlockSpec((tm_ks, tn_ks), lambda i, j, k: (i, j)),
            scratch_shapes=[pltpu.VMEM((tm_ks, tn_ks), jnp.float32)],
        )
        dim_sem = ("parallel", "parallel", "arbitrary")
        step_bytes = (2 * (tm_ks * tk_ks * itx + tn_ks * tk_ks * itw
                           + tn_ks * itb + tm_ks * tn_ks * ito)
                      + tm_ks * tn_ks * 4)
        vmem_limit = min(hard_limit,
                         max(32 * _MiB, int(step_bytes * 1.25) + 2 * _MiB))

    y2 = pl.pallas_call(
        kernel,
        out_shape=jax.ShapeDtypeStruct((M, N), out_dtype),
        grid_spec=grid_spec,
        compiler_params=pltpu.CompilerParams(
            dimension_semantics=dim_sem,
            vmem_limit_bytes=vmem_limit,
        ),
    )(x2, weight, bias.reshape(1, N))

    return y2.reshape(*orig_shape[:-1], N)


if __name__ == "__main__":
    # MappingLayer default-ish shapes:
    #   batch = 8, num_teacher_features = 256, num_student_features = 128
    batch, n_teacher, n_student = 8, 256, 128

    key = jax.random.PRNGKey(0)
    kx, kw, kb = jax.random.split(key, 3)
    x = jax.random.normal(kx, (batch, n_teacher), dtype=jnp.float32)
    weight = jax.random.normal(
        kw, (n_student, n_teacher), dtype=jnp.float32) / jnp.sqrt(n_teacher)
    bias = jax.random.normal(kb, (n_student,), dtype=jnp.float32) * 0.01
    y_ref = x @ weight.T + bias

    # (a) Default entry: tiny problem dispatches to the fused XLA dot.
    y0 = jax.block_until_ready(mapping_layer(x, weight, bias))
    assert y0.shape == (batch, n_student)
    assert jnp.allclose(y0, y_ref, atol=1e-4, rtol=1e-4)

    # (b) Same shapes forced through the Pallas full-K kernel (bf16 MXU, f32 acc).
    y1 = jax.block_until_ready(mapping_layer(x, weight, bias, force_pallas=True))
    assert y1.shape == (batch, n_student)
    assert jnp.allclose(y1, y_ref, atol=3e-2, rtol=3e-2)

    # Full-precision Pallas path (no bf16 cast) — tight check.
    y1f = jax.block_until_ready(
        mapping_layer(x, weight, bias, force_pallas=True, compute_dtype=None))
    assert jnp.allclose(y1f, y_ref, atol=1e-4, rtol=1e-4)

    # (c) K-split accumulator path with K not a multiple of tk
    #     (exercises in-kernel last-block masking); forced via a tiny budget.
    M2, K2, N2 = 128, 896, 256
    kx2, kw2, kb2 = jax.random.split(jax.random.PRNGKey(1), 3)
    x2 = jax.random.normal(kx2, (M2, K2), dtype=jnp.float32)
    w2 = jax.random.normal(kw2, (N2, K2), dtype=jnp.float32) / jnp.sqrt(K2)
    b2 = jax.random.normal(kb2, (N2,), dtype=jnp.float32) * 0.01
    y2 = jax.block_until_ready(
        mapping_layer(x2, w2, b2, force_pallas=True, compute_dtype=None,
                      vmem_budget_bytes=1, tk=512))
    y2_ref = x2 @ w2.T + b2
    assert y2.shape == (M2, N2)
    assert jnp.allclose(y2, y2_ref, atol=1e-3, rtol=1e-3)

    print("KERNEL_OK")
</pallas_src>

<mosaic_0001>
module attributes {stable_mosaic.version = 11 : i64} {
  func.func @_mapping_kernel_fullk(%arg0: i32, %arg1: i32, %arg2: memref<8x256xf32, #tpu.memory_space<vmem>>, %arg3: memref<128x256xf32, #tpu.memory_space<vmem>>, %arg4: memref<1x128xf32, #tpu.memory_space<vmem>>, %arg5: memref<8x128xf32, #tpu.memory_space<vmem>>) attributes {dimension_semantics = [#tpu.dimension_semantics<parallel>, #tpu.dimension_semantics<parallel>], iteration_bounds = array<i64: 1, 1>, scalar_prefetch = 0 : i64, scratch_operands = 0 : i64, tpu.core_type = #tpu.core_type<tc>, window_params = [{transform_indices = @transform_0, window_bounds = array<i64: 8, 256>}, {transform_indices = @transform_1, window_bounds = array<i64: 128, 256>}, {transform_indices = @transform_2, window_bounds = array<i64: 1, 128>}, {transform_indices = @transform_3, window_bounds = array<i64: 8, 128>}]} {
    %c0 = arith.constant 0 : index
    %c0_0 = arith.constant 0 : index
    %0 = vector.load %arg2[%c0, %c0_0] : memref<8x256xf32, #tpu.memory_space<vmem>>, vector<8x256xf32>
    %c0_1 = arith.constant 0 : index
    %c0_2 = arith.constant 0 : index
    %1 = vector.load %arg3[%c0_1, %c0_2] : memref<128x256xf32, #tpu.memory_space<vmem>>, vector<128x256xf32>
    %2 = arith.truncf %0 : vector<8x256xf32> to vector<8x256xbf16>
    %3 = arith.truncf %1 : vector<128x256xf32> to vector<128x256xbf16>
    %cst = arith.constant dense<0.000000e+00> : vector<8x128xf32>
    %4 = tpu.matmul %2, %3, %cst {dimension_numbers = #tpu.dot_dimension_numbers<[1], [1], [0], [0], [0, 0, 1, 0], [], []>} : vector<8x256xbf16>, vector<128x256xbf16>, vector<8x128xf32> -> vector<8x128xf32>
    %c0_3 = arith.constant 0 : index
    %c0_4 = arith.constant 0 : index
    %5 = vector.load %arg4[%c0_3, %c0_4] : memref<1x128xf32, #tpu.memory_space<vmem>>, vector<1x128xf32>
    %6 = vector.broadcast %5 : vector<1x128xf32> to vector<8x128xf32>
    %7 = arith.addf %4, %6 : vector<8x128xf32>
    %c0_5 = arith.constant 0 : index
    %c0_6 = arith.constant 0 : index
    %8 = vector.load %arg5[%c0_5, %c0_6] : memref<8x128xf32, #tpu.memory_space<vmem>>, vector<8x128xf32>
    tpu.vector_store %arg5[%c0_5, %c0_6], %7 {strides = array<i32>} : memref<8x128xf32, #tpu.memory_space<vmem>>, vector<8x128xf32>,
    return
  }
  func.func @transform_0(%arg0: i32, %arg1: i32) -> (i32, i32) {
    %c0_i32 = arith.constant 0 : i32
    %c0_i32_0 = arith.constant 0 : i32
    return %arg1, %c0_i32 : i32, i32
  }
  func.func @transform_1(%arg0: i32, %arg1: i32) -> (i32, i32) {
    %c0_i32 = arith.constant 0 : i32
    %c0_i32_0 = arith.constant 0 : i32
    return %arg0, %c0_i32 : i32, i32
  }
  func.func @transform_2(%arg0: i32, %arg1: i32) -> (i32, i32) {
    %c0_i32 = arith.constant 0 : i32
    %c0_i32_0 = arith.constant 0 : i32
    return %c0_i32, %arg0 : i32, i32
  }
  func.func @transform_3(%arg0: i32, %arg1: i32) -> (i32, i32) {
    %c0_i32 = arith.constant 0 : i32
    return %arg1, %arg0 : i32, i32
  }
}

</mosaic_0001>

<bundles_post_ra>
// kernel: tpu_custom_call.1
= control target key start
LH: loop header
LB: loop body
LE: loop exit
PB: predicated region body
PF: predicated region fallthrough
CT: control target
= control target key end

     0   :  { %8 = vsyncpa [#allocation3], 0  ;;  %s267_s0 = inlined_call_operand.hbm [shape: f32[8,256], index: 0, kind: input, shape index: {}]   ;;  %s268_s1 = inlined_call_operand.hbm [shape: f32[128,256], index: 1, kind: input, shape index: {}]   ;;  %s269_s2 = inlined_call_operand.vmem [shape: f32[1,128], index: 2, kind: input, shape index: {}]   ;;  %s270_s3 = inlined_call_operand.hbm [shape: f32[8,128], index: 3, kind: output, shape index: {}]  }
   0x1   :  { %9 = vsyncpa [#allocation6], 0 }
   0x2   :  { %10 = vsyncpa [#allocation4], 0  ;;  %s230_s12 = smov [#allocation2]   ;;  %s231_s14 = smov [#allocation5]  }
   0x3   :  { %s17_s13 = sshll.u32 %s230_s12, 4  ;;  %s26_s15 = sshll.u32 %s231_s14, 4  ;;  %s18_s13 = int_to_ptr.vmem [resolvable:$true] %s17_s13  ;;  %s27_s15 = int_to_ptr.vmem [resolvable:$true] %s26_s15 }
   0x4   :  { %s172_s16 = scalar_lea.vmem %s18_s13, 256  ;;  %p177_p1 = scmp.lt.s32.totalorder %s18_s13, %s18_s13 }
   0x5   :  { %p173_p0 = scmp.ne.s32.totalorder %s18_s13, %s172_s16  ;;  %p178_p2 = scmp.lt.s32.totalorder %s172_s16, %s172_s16 }
   0x7   :  { %p179_p3 = por %p178_p2, %p177_p1 }
   0x9   :  { %p180_p4 = pnand %p179_p3, %p173_p0 }
   0xb   :  { %183 = shalt.err (!%p180_p4)
}
   0xc   :  { %20 = dma.hbm_to_vmem [thread:$0]  %s267_s0, 256, %s18_s13, [#allocation3]  }
   0xd   :  { %s192_s19 = scalar_lea.vmem %s27_s15, 4096  ;;  %p197_p6 = scmp.lt.s32.totalorder %s27_s15, %s27_s15 }
   0xe   :  { %p193_p5 = scmp.ne.s32.totalorder %s27_s15, %s192_s19  ;;  %p198_p7 = scmp.lt.s32.totalorder %s192_s19, %s192_s19 }
  0x10   :  { %p199_p8 = por %p198_p7, %p197_p6 }
  0x12   :  { %p200_p9 = pnand %p199_p8, %p193_p5 }
  0x14   :  { %203 = shalt.err (!%p200_p9)
}
  0x15   :  { %s232_s20 = smov 256   ;;  %s233_s21 = smov 16  }
  0x16   :  { %32 = dma.hbm_to_vmem [thread:$0]  %s268_s1, 4096, %s27_s15, [#allocation6], %s232_s20, %s232_s20, %s233_s21  }
  0x17   :  { %224 = dma.done.wait [#allocation3], 256  }
  0x18   :  { %225 = vsyncadd [#allocation3], 4294967040 }
  0x19   :  { %226 = dma.done.wait [#allocation6], 4096  }
  0x1a   :  { %227 = vsyncadd [#allocation6], 4294963200  ;;  %v73_v0 = vld [vmem:[#allocation5 + $0xe8] sm:$0xff]  ;;  %v75_v1 = vld [vmem:[#allocation5 + $0xf8] sm:$0xff]  ;;  %s234_s24 = smov [#allocation7]  }
  0x1b   :  { %v72_v2 = vld [vmem:[#allocation5 + $0xe0] sm:$0xff]  ;;  %v93_v3 = vpack.c.bf16 %v75_v1, %v73_v0  ;;  %v74_v4 = vld [vmem:[#allocation5 + $0xf0] sm:$0xff]  ;;  %v69_v5 = vld [vmem:[#allocation5 + $0xc8] sm:$0xff]  ;;  %s148_s25 = sshll.u32 %s234_s24, 4  ;;  %s149_s25 = int_to_ptr.vmem [resolvable:$true] %s148_s25 }
  0x1c   :  { %v71_v6 = vld [vmem:[#allocation5 + $0xd8] sm:$0xff]  ;;  %v92_v7 = vpack.c.bf16 %v74_v4, %v72_v2  ;;  %v68_v9 = vld [vmem:[#allocation5 + $0xc0] sm:$0xff]  ;;  %v70_v10 = vld [vmem:[#allocation5 + $0xd0] sm:$0xff]  ;;  %s204_s26 = scalar_lea.vmem %s149_s25, 128  ;;  %p209_p11 = scmp.lt.s32.totalorder %s149_s25, %s149_s25 }
  0x1d   :  { %v91_v8 = vpack.c.bf16 %v71_v6, %v69_v5  ;;  %101 = vmatprep.subr.bf16.mxu0 %v93_v3  ;;  %v65_v11 = vld [vmem:[#allocation5 + $0xa8] sm:$0xff]  ;;  %v67_v12 = vld [vmem:[#allocation5 + $0xb8] sm:$0xff]  ;;  %v90_v13 = vpack.c.bf16 %v70_v10, %v68_v9  ;;  %v64_v17 = vld [vmem:[#allocation5 + $0xa0] sm:$0xff]  ;;  %p205_p10 = scmp.ne.s32.totalorder %s149_s25, %s204_s26  ;;  %p210_p12 = scmp.lt.s32.totalorder %s204_s26, %s204_s26 }
  0x1e   :  { %102 = vmatpush1.bf16.xpose.msra.mxu0 %v92_v7  ;;  %v89_v14 = vpack.c.bf16 %v67_v12, %v65_v11  ;;  %v43_v15 = vld [vmem:[#allocation2 + $0x8] sm:$0xff]  ;;  %v66_v18 = vld [vmem:[#allocation5 + $0xb0] sm:$0xff]  ;;  %v61_v19 = vld [vmem:[#allocation5 + $0x88] sm:$0xff] }
  0x1f   :  { %103 = vmatprep.subr.bf16.mxu0 %v91_v8  ;;  %v77_v16 = vpack.c.bf16 %v43_v15, %v43_v15  ;;  %v63_v20 = vld [vmem:[#allocation5 + $0x98] sm:$0xff]  ;;  %v88_v21 = vpack.c.bf16 %v66_v18, %v64_v17  ;;  %v60_v23 = vld [vmem:[#allocation5 + $0x80] sm:$0xff]  ;;  %v62_v24 = vld [vmem:[#allocation5 + $0x90] sm:$0xff]  ;;  %p211_p13 = por %p210_p12, %p209_p11 }
  0x20   :  { %v87_v22 = vpack.c.bf16 %v63_v20, %v61_v19  ;;  %v57_v25 = vld [vmem:[#allocation5 + $0x68] sm:$0xff]  ;;  %v59_v26 = vld [vmem:[#allocation5 + $0x78] sm:$0xff]  ;;  %v86_v27 = vpack.c.bf16 %v62_v24, %v60_v23  ;;  %v56_v29 = vld [vmem:[#allocation5 + $0x60] sm:$0xff] }
  0x21   :  { %133 = vmatprep.mubr.bf16.mxu0 %v77_v16  ;;  %v85_v28 = vpack.c.bf16 %v59_v26, %v57_v25  ;;  %v58_v30 = vld [vmem:[#allocation5 + $0x70] sm:$0xff]  ;;  %v53_v31 = vld [vmem:[#allocation5 + $0x48] sm:$0xff]  ;;  %v55_v32 = vld [vmem:[#allocation5 + $0x58] sm:$0xff]  ;;  %p212_p0 = pnand %p211_p13, %p205_p10 }
  0x22   :  { %v84_v33 = vpack.c.bf16 %v58_v30, %v56_v29  ;;  %v83_v34 = vpack.c.bf16 %v55_v32, %v53_v31  ;;  %v52_v35 = vld [vmem:[#allocation5 + $0x40] sm:$0xff]  ;;  %v54_v36 = vld [vmem:[#allocation5 + $0x50] sm:$0xff]  ;;  %v49_v37 = vld [vmem:[#allocation5 + $0x28] sm:$0xff] }
  0x23   :  { %v51_v38 = vld [vmem:[#allocation5 + $0x38] sm:$0xff]  ;;  %v82_v39 = vpack.c.bf16 %v54_v36, %v52_v35  ;;  %v48_v41 = vld [vmem:[#allocation5 + $0x20] sm:$0xff]  ;;  %v50_v42 = vld [vmem:[#allocation5 + $0x30] sm:$0xff] }
  0x24   :  { %v81_v40 = vpack.c.bf16 %v51_v38, %v49_v37  ;;  %v45_v43 = vld [vmem:[#allocation5 + $0x8] sm:$0xff]  ;;  %v47_v44 = vld [vmem:[#allocation5 + $0x18] sm:$0xff]  ;;  %v80_v45 = vpack.c.bf16 %v50_v42, %v48_v41  ;;  %v44_v47 = vld [vmem:[#allocation5] sm:$0xff] }
  0x25   :  { %v79_v46 = vpack.c.bf16 %v47_v44, %v45_v43  ;;  %v46_v48 = vld [vmem:[#allocation5 + $0x10] sm:$0xff] }
  0x26   :  { %104 = vmatpush1.bf16.xpose.msra.mxu0 %v90_v13  ;;  %v78_v49 = vpack.c.bf16 %v46_v48, %v44_v47  ;;  %v42_v50 = vld [vmem:[#allocation2] sm:$0xff] }
  0x27   :  { %105 = vmatprep.subr.bf16.mxu0 %v89_v14  ;;  %v76_v51 = vpack.c.bf16 %v42_v50, %v42_v50  ;;  %v158_v52 = vld [vmem:[%s269_s2] ss:$0 sm:$0xff] }
  0x2e   :  { %106 = vmatpush1.bf16.xpose.msra.mxu0 %v88_v21 }
  0x2f   :  { %107 = vmatprep.subr.bf16.mxu0 %v87_v22 }
  0x36   :  { %108 = vmatpush1.bf16.xpose.msra.mxu0 %v86_v27 }
  0x37   :  { %109 = vmatprep.subr.bf16.mxu0 %v85_v28 }
  0x3e   :  { %110 = vmatpush1.bf16.xpose.msra.mxu0 %v84_v33 }
  0x3f   :  { %111 = vmatprep.subr.bf16.mxu0 %v83_v34 }
  0x46   :  { %112 = vmatpush1.bf16.xpose.msra.mxu0 %v82_v39 }
  0x47   :  { %113 = vmatprep.subr.bf16.mxu0 %v81_v40 }
  0x4e   :  { %114 = vmatpush1.bf16.xpose.msra.mxu0 %v80_v45 }
  0x4f   :  { %115 = vmatprep.subr.bf16.mxu0 %v79_v46 }
  0x56   :  { %116 = vmatpush1.bf16.xpose.msra.mxu0 %v78_v49 }
  0x5d   :  { %134 = vmatmul.mubr.bf16.vlgmr.msra.gmra.mxu0 %v76_v51 }
 0x11d   :  { %v135_v53 = vpop.f32.mrf.mxu0 }
 0x11e   :  { %v136_v54 = vadd.f32 %v158_v52, %v135_v53 }
 0x11f   :  { %v137_v55 = vpop.f32.mrf.mxu0 }
 0x120   :  { %141 = vst [vmem:[#allocation7] sm:$0xff] %v136_v54 }
 0x121   :  { %v138_v56 = vpop.f32.mrf.mxu0 }
 0x122   :  { %215 = shalt.err (!%p212_p0)
}
 0x123   :  { %151 = dma.vmem_to_hbm [thread:$0]  %s149_s25, 128, %s270_s3, [#allocation4]   ;;  %v139_v57 = vpop.f32.mrf.mxu0 }
 0x124   :  { %228 = dma.done.wait [#allocation4], 128  }
 0x125   :  { %229 = vsyncadd [#allocation4], 4294967168 }
 0x126   :  { %155 = vsyncpa [#allocation3], 1 }
 0x127   :  { %156 = vsyncpa [#allocation6], 1 }
 0x128   :  { %157 = vsyncpa [#allocation4], 1 }

</bundles_post_ra>
